<compile_context>
chip_gen: v7x
topology: tpu7x:2x2x1
jax: 0.10.0
libtpu: 0.0.40
codegen_flags: <defaults>
</compile_context>

<pallas_src>
import functools

import jax
import jax.numpy as jnp
from jax import lax
from jax.experimental import pallas as pl
from jax.experimental.pallas import tpu as pltpu

_LANE = 128
_SUBLANE = 8
_TARGET_BLOCK_BYTES = 2 * 1024 * 1024    # ~2 MiB blocks: measured roofline sweet spot
_VMEM_LIMIT_BYTES = 48 * 1024 * 1024     # safe on v5e/v6e (128 MiB) and v7x (64 MiB)


def _round_up(v, m):
    return ((v + m - 1) // m) * m


def _pick_tile(rows, lane_width, itemsize):
    """Byte-sized row tile: multiple of 8, >=2 grid steps when rows>=16."""
    tile = _TARGET_BLOCK_BYTES // max(1, lane_width * itemsize)
    tile = max(_SUBLANE, (tile // _SUBLANE) * _SUBLANE)
    if rows >= 2 * _SUBLANE:
        # Guarantee at least 2 grid steps so both v7x TensorCores get work.
        tile = min(tile, _round_up(pl.cdiv(rows, 2), _SUBLANE))
    if tile >= rows:
        tile = rows  # single full-array block (any row count allowed)
    return tile


def _layer_norm_kernel(x_ref, w_ref, b_ref, o_ref, *, eps, hidden):
    # Plain path: x_ref (tile, H) with H the true (lane-dense) hidden width.
    x = x_ref[...].astype(jnp.float32)
    inv_h = 1.0 / float(hidden)
    u = jnp.sum(x, axis=-1, keepdims=True) * inv_h            # mean
    xc = x - u
    s = jnp.sum(xc * xc, axis=-1, keepdims=True) * inv_h      # biased variance
    w = w_ref[...].astype(jnp.float32)                        # (1, H)
    b = b_ref[...].astype(jnp.float32)                        # (1, H)
    o_ref[...] = (w * (xc * lax.rsqrt(s + eps)) + b).astype(o_ref.dtype)


def _layer_norm_folded_kernel(x_ref, w_ref, b_ref, m_ref, mt_ref, o_ref, *,
                              eps, hidden):
    # Folded path: x_ref (tile, G*H) where each 128-wide lane row holds G
    # original rows.  Per-segment mean/var via tiny 0/1 matmuls:
    #   M  : (G*H, G) segment-sum matrix
    #   MT : (G, G*H) segment-broadcast matrix
    x = x_ref[...].astype(jnp.float32)
    M = m_ref[...]
    MT = mt_ref[...]
    inv_h = 1.0 / float(hidden)

    mean_g = jnp.dot(x, M, preferred_element_type=jnp.float32) * inv_h      # (tile, G)
    xc = x - jnp.dot(mean_g, MT, preferred_element_type=jnp.float32)        # (tile, GH)
    var_g = jnp.dot(xc * xc, M, preferred_element_type=jnp.float32) * inv_h  # (tile, G)
    rstd = jnp.dot(lax.rsqrt(var_g + eps), MT,
                   preferred_element_type=jnp.float32)                      # (tile, GH)

    w = w_ref[...].astype(jnp.float32)                                      # (1, GH)
    b = b_ref[...].astype(jnp.float32)                                      # (1, GH)
    o_ref[...] = (w * (xc * rstd) + b).astype(o_ref.dtype)


def layer_norm(x, weight, bias, *, eps=1e-12):
    """x: [..., H]; weight, bias: [H] -> same shape as x."""
    orig_shape = x.shape
    H = orig_shape[-1]
    rows = 1
    for d in orig_shape[:-1]:
        rows *= d

    x2 = x.reshape(rows, H)
    itemsize = jnp.dtype(x.dtype).itemsize

    compiler_params = pltpu.CompilerParams(
        dimension_semantics=("parallel",),
        vmem_limit_bytes=_VMEM_LIMIT_BYTES,
    )

    # Lane-dense folding for genuinely small H (e.g. demo H=32).
    fold = (H < _LANE) and (_LANE % H == 0) and (rows % (_LANE // H) == 0)

    if fold:
        G = _LANE // H
        GH = G * H                      # = 128, fully lane-dense
        rows_f = rows // G
        x_f = x2.reshape(rows_f, GH)
        w_f = jnp.tile(weight.reshape(1, H), (1, G))
        b_f = jnp.tile(bias.reshape(1, H), (1, G))
        seg = (jnp.arange(GH)[:, None] // H) == jnp.arange(G)[None, :]
        M = seg.astype(jnp.float32)     # (GH, G)
        MT = M.T                        # (G, GH)

        tile = _pick_tile(rows_f, GH, itemsize)
        grid = (pl.cdiv(rows_f, tile),)
        kernel = functools.partial(_layer_norm_folded_kernel, eps=eps, hidden=H)
        out = pl.pallas_call(
            kernel,
            out_shape=jax.ShapeDtypeStruct((rows_f, GH), x.dtype),
            grid_spec=pltpu.PrefetchScalarGridSpec(
                num_scalar_prefetch=0,
                grid=grid,
                in_specs=[
                    pl.BlockSpec((tile, GH), lambda i: (i, 0)),
                    pl.BlockSpec((1, GH), lambda i: (0, 0)),
                    pl.BlockSpec((1, GH), lambda i: (0, 0)),
                    pl.BlockSpec((GH, G), lambda i: (0, 0)),
                    pl.BlockSpec((G, GH), lambda i: (0, 0)),
                ],
                out_specs=pl.BlockSpec((tile, GH), lambda i: (i, 0)),
            ),
            compiler_params=compiler_params,
        )(x_f, w_f, b_f, M, MT)
        return out.reshape(orig_shape)

    # General path (production H is expected to be a multiple of 128, which is
    # already lane-dense; other H still works with the full-H lane block).
    w2 = weight.reshape(1, H)
    b2 = bias.reshape(1, H)
    tile = _pick_tile(rows, H, itemsize)
    grid = (pl.cdiv(rows, tile),)
    kernel = functools.partial(_layer_norm_kernel, eps=eps, hidden=H)
    out = pl.pallas_call(
        kernel,
        out_shape=jax.ShapeDtypeStruct((rows, H), x.dtype),
        grid_spec=pltpu.PrefetchScalarGridSpec(
            num_scalar_prefetch=0,
            grid=grid,
            in_specs=[
                pl.BlockSpec((tile, H), lambda i: (i, 0)),
                pl.BlockSpec((1, H), lambda i: (0, 0)),
                pl.BlockSpec((1, H), lambda i: (0, 0)),
            ],
            out_specs=pl.BlockSpec((tile, H), lambda i: (i, 0)),
        ),
        compiler_params=compiler_params,
    )(x2, w2, b2)
    return out.reshape(orig_shape)


def _reference(x, weight, bias, eps=1e-12):
    u = jnp.mean(x, axis=-1, keepdims=True)
    s = jnp.mean((x - u) ** 2, axis=-1, keepdims=True)
    y = (x - u) / jnp.sqrt(s + eps)
    return weight * y + bias


if __name__ == "__main__":
    key = jax.random.PRNGKey(0)
    k1, k2, k3, k4 = jax.random.split(key, 4)

    # Demo shape consistent with the module: batch=2, seq=8, hidden=32.
    B, S, H = 2, 8, 32
    x = jax.random.normal(k1, (B, S, H), dtype=jnp.float32)
    # Module initializes weight=ones, bias=zeros; use non-trivial values so the
    # affine part is exercised.
    weight = 1.0 + 0.1 * jax.random.normal(k2, (H,), dtype=jnp.float32)
    bias = 0.1 * jax.random.normal(k3, (H,), dtype=jnp.float32)

    out = layer_norm(x, weight, bias, eps=1e-12)          # exercises folded path
    jax.block_until_ready(out)
    ref = _reference(x, weight, bias, eps=1e-12)
    assert out.shape == x.shape
    assert jnp.allclose(out, ref, atol=1e-5, rtol=1e-5)

    # Also exercise the general (lane-dense H, multi-step grid) path.
    H2 = 128
    x2 = jax.random.normal(k4, (B, S, H2), dtype=jnp.float32)
    w2 = 1.0 + 0.1 * jax.random.normal(k2, (H2,), dtype=jnp.float32)
    b2 = 0.1 * jax.random.normal(k3, (H2,), dtype=jnp.float32)
    out2 = layer_norm(x2, w2, b2, eps=1e-12)
    jax.block_until_ready(out2)
    ref2 = _reference(x2, w2, b2, eps=1e-12)
    assert out2.shape == x2.shape
    assert jnp.allclose(out2, ref2, atol=1e-5, rtol=1e-5)

    print("KERNEL_OK")
</pallas_src>

<mosaic_0001>
module attributes {stable_mosaic.version = 11 : i64} {
  func.func @_layer_norm_folded_kernel(%arg0: i32, %arg1: memref<4x128xf32, #tpu.memory_space<vmem>>, %arg2: memref<1x128xf32, #tpu.memory_space<vmem>>, %arg3: memref<1x128xf32, #tpu.memory_space<vmem>>, %arg4: memref<128x4xf32, #tpu.memory_space<vmem>>, %arg5: memref<4x128xf32, #tpu.memory_space<vmem>>, %arg6: memref<4x128xf32, #tpu.memory_space<vmem>>) attributes {dimension_semantics = [#tpu.dimension_semantics<parallel>], iteration_bounds = array<i64: 1>, scalar_prefetch = 0 : i64, scratch_operands = 0 : i64, tpu.core_type = #tpu.core_type<tc>, window_params = [{transform_indices = @transform_0, window_bounds = array<i64: 4, 128>}, {pipeline_mode = #tpu.pipeline_mode<synchronous>, transform_indices = @transform_1, window_bounds = array<i64: 1, 128>}, {pipeline_mode = #tpu.pipeline_mode<synchronous>, transform_indices = @transform_2, window_bounds = array<i64: 1, 128>}, {pipeline_mode = #tpu.pipeline_mode<synchronous>, transform_indices = @transform_3, window_bounds = array<i64: 128, 4>}, {pipeline_mode = #tpu.pipeline_mode<synchronous>, transform_indices = @transform_4, window_bounds = array<i64: 4, 128>}, {transform_indices = @transform_5, window_bounds = array<i64: 4, 128>}]} {
    %c0 = arith.constant 0 : index
    %c0_0 = arith.constant 0 : index
    %0 = vector.load %arg1[%c0, %c0_0] : memref<4x128xf32, #tpu.memory_space<vmem>>, vector<4x128xf32>
    %c0_1 = arith.constant 0 : index
    %c0_2 = arith.constant 0 : index
    %1 = vector.load %arg4[%c0_1, %c0_2] : memref<128x4xf32, #tpu.memory_space<vmem>>, vector<128x4xf32>
    %c0_3 = arith.constant 0 : index
    %c0_4 = arith.constant 0 : index
    %2 = vector.load %arg5[%c0_3, %c0_4] : memref<4x128xf32, #tpu.memory_space<vmem>>, vector<4x128xf32>
    %cst = arith.constant dense<0.000000e+00> : vector<4x4xf32>
    %3 = tpu.matmul %0, %1, %cst {dimension_numbers = #tpu.dot_dimension_numbers<[1], [0], [0], [1], [0, 0, 1, 1], [], []>} : vector<4x128xf32>, vector<128x4xf32>, vector<4x4xf32> -> vector<4x4xf32>
    %cst_5 = arith.constant 3.125000e-02 : f32
    %4 = vector.broadcast %cst_5 : f32 to vector<4x4xf32>
    %5 = arith.mulf %3, %4 : vector<4x4xf32>
    %cst_6 = arith.constant dense<0.000000e+00> : vector<4x128xf32>
    %6 = tpu.matmul %5, %2, %cst_6 {dimension_numbers = #tpu.dot_dimension_numbers<[1], [0], [0], [1], [0, 0, 1, 1], [], []>} : vector<4x4xf32>, vector<4x128xf32>, vector<4x128xf32> -> vector<4x128xf32>
    %7 = arith.subf %0, %6 : vector<4x128xf32>
    %8 = arith.mulf %7, %7 : vector<4x128xf32>
    %cst_7 = arith.constant dense<0.000000e+00> : vector<4x4xf32>
    %9 = tpu.matmul %8, %1, %cst_7 {dimension_numbers = #tpu.dot_dimension_numbers<[1], [0], [0], [1], [0, 0, 1, 1], [], []>} : vector<4x128xf32>, vector<128x4xf32>, vector<4x4xf32> -> vector<4x4xf32>
    %cst_8 = arith.constant 3.125000e-02 : f32
    %10 = vector.broadcast %cst_8 : f32 to vector<4x4xf32>
    %11 = arith.mulf %9, %10 : vector<4x4xf32>
    %cst_9 = arith.constant 9.99999996E-13 : f32
    %12 = vector.broadcast %cst_9 : f32 to vector<4x4xf32>
    %13 = arith.addf %11, %12 : vector<4x4xf32>
    %14 = math.rsqrt %13 : vector<4x4xf32>
    %cst_10 = arith.constant dense<0.000000e+00> : vector<4x128xf32>
    %15 = tpu.matmul %14, %2, %cst_10 {dimension_numbers = #tpu.dot_dimension_numbers<[1], [0], [0], [1], [0, 0, 1, 1], [], []>} : vector<4x4xf32>, vector<4x128xf32>, vector<4x128xf32> -> vector<4x128xf32>
    %c0_11 = arith.constant 0 : index
    %c0_12 = arith.constant 0 : index
    %16 = vector.load %arg2[%c0_11, %c0_12] : memref<1x128xf32, #tpu.memory_space<vmem>>, vector<1x128xf32>
    %c0_13 = arith.constant 0 : index
    %c0_14 = arith.constant 0 : index
    %17 = vector.load %arg3[%c0_13, %c0_14] : memref<1x128xf32, #tpu.memory_space<vmem>>, vector<1x128xf32>
    %18 = arith.mulf %7, %15 : vector<4x128xf32>
    %19 = vector.broadcast %16 : vector<1x128xf32> to vector<4x128xf32>
    %20 = arith.mulf %19, %18 : vector<4x128xf32>
    %21 = vector.broadcast %17 : vector<1x128xf32> to vector<4x128xf32>
    %22 = arith.addf %20, %21 : vector<4x128xf32>
    %c0_15 = arith.constant 0 : index
    %c0_16 = arith.constant 0 : index
    %23 = vector.load %arg6[%c0_15, %c0_16] : memref<4x128xf32, #tpu.memory_space<vmem>>, vector<4x128xf32>
    tpu.vector_store %arg6[%c0_15, %c0_16], %22 {strides = array<i32>} : memref<4x128xf32, #tpu.memory_space<vmem>>, vector<4x128xf32>,
    return
  }
  func.func @transform_0(%arg0: i32) -> (i32, i32) {
    %c0_i32 = arith.constant 0 : i32
    %c0_i32_0 = arith.constant 0 : i32
    return %arg0, %c0_i32 : i32, i32
  }
  func.func @transform_1(%arg0: i32) -> (i32, i32) {
    %c0_i32 = arith.constant 0 : i32
    %c0_i32_0 = arith.constant 0 : i32
    %c0_i32_1 = arith.constant 0 : i32
    return %c0_i32, %c0_i32_0 : i32, i32
  }
  func.func @transform_2(%arg0: i32) -> (i32, i32) {
    %c0_i32 = arith.constant 0 : i32
    %c0_i32_0 = arith.constant 0 : i32
    %c0_i32_1 = arith.constant 0 : i32
    return %c0_i32, %c0_i32_0 : i32, i32
  }
  func.func @transform_3(%arg0: i32) -> (i32, i32) {
    %c0_i32 = arith.constant 0 : i32
    %c0_i32_0 = arith.constant 0 : i32
    %c0_i32_1 = arith.constant 0 : i32
    return %c0_i32, %c0_i32_0 : i32, i32
  }
  func.func @transform_4(%arg0: i32) -> (i32, i32) {
    %c0_i32 = arith.constant 0 : i32
    %c0_i32_0 = arith.constant 0 : i32
    %c0_i32_1 = arith.constant 0 : i32
    return %c0_i32, %c0_i32_0 : i32, i32
  }
  func.func @transform_5(%arg0: i32) -> (i32, i32) {
    %c0_i32 = arith.constant 0 : i32
    %c0_i32_0 = arith.constant 0 : i32
    return %arg0, %c0_i32 : i32, i32
  }
}

</mosaic_0001>

<bundles_post_ra>
// kernel: tpu_custom_call.1
= control target key start
LH: loop header
LB: loop body
LE: loop exit
PB: predicated region body
PF: predicated region fallthrough
CT: control target
= control target key end

     0   :  { %v570_v3 = vmov 0.0|0.0   ;;  %vm571_vm0 = vmmov 0   ;;  %v572_v6 = vmov 0.0   ;;  %s698_s0 = inlined_call_operand.vmem [shape: f32[4,128], index: 0, kind: input, shape index: {}]   ;;  %s699_s1 = inlined_call_operand.vmem [shape: f32[1,128], index: 1, kind: input, shape index: {}]   ;;  %s700_s2 = inlined_call_operand.vmem [shape: f32[1,128], index: 2, kind: input, shape index: {}]   ;;  %s701_s3 = inlined_call_operand.vmem [shape: f32[128,4], index: 3, kind: input, shape index: {}]   ;;  %s702_s4 = inlined_call_operand.vmem [shape: f32[4,128], index: 4, kind: input, shape index: {}]   ;;  %s703_s5 = inlined_call_operand.hbm [shape: f32[4,128], index: 5, kind: output, shape index: {}]  }
   0x1   :  { %v22_v0 = vld [vmem:[%s701_s3] sm:$0xff]  ;;  %v23_v1 = vld [vmem:[%s701_s3 + $0x8] sm:$0xff]  ;;  %v24_v2 = vld [vmem:[%s701_s3 + $0x10] sm:$0xff]  ;;  %492 = vmatprep.subr.bf16.mxu0 %v570_v3  ;;  %444 = vmatprep.mubr.msk.f32.mxu0 %vm571_vm0, %v572_v6 }
   0x2   :  { %v493_v4 = vpack.c.bf16 %v23_v1, %v22_v0  ;;  %v25_v5 = vld [vmem:[%s701_s3 + $0x18] sm:$0xff]  ;;  %447 = vmatprep.subr.mxu1 %v572_v6  ;;  %449 = vmatprep.mubr.msk.f32.mxu1 %vm571_vm0, %v572_v6  ;;  %v26_v8 = vld [vmem:[%s701_s3 + $0x20] sm:$0xff]  ;;  %v27_v9 = vld [vmem:[%s701_s3 + $0x28] sm:$0xff] }
   0x3   :  { %v496_v7 = vpack.c.bf16 %v25_v5, %v24_v2 }
   0x4   :  { %494 = vmatpush3.bf16.msra.mxu0 %v493_v4 }
   0x5   :  { %495 = vmatprep.subr.bf16.mxu0 %v570_v3 }
   0x6   :  { %10 = vsyncpa [#allocation3], 0  ;;  %v499_v10 = vpack.c.bf16 %v27_v9, %v26_v8  ;;  %v28_v11 = vld [vmem:[%s701_s3 + $0x30] sm:$0xff]  ;;  %v29_v12 = vld [vmem:[%s701_s3 + $0x38] sm:$0xff]  ;;  %vm114_vm1 = vcmask 1043456   ;;  %vm110_vm2 = vcmask 31744  }
   0x7   :  { %v502_v13 = vpack.c.bf16 %v29_v12, %v28_v11  ;;  %v30_v14 = vld [vmem:[%s701_s3 + $0x40] sm:$0xff]  ;;  %v31_v15 = vld [vmem:[%s701_s3 + $0x48] sm:$0xff]  ;;  %v32_v17 = vld [vmem:[%s701_s3 + $0x50] sm:$0xff]  ;;  %s573_s30 = smov [#allocation2]  }
   0x8   :  { %497 = vmatpush3.bf16.msra.mxu0 %v496_v7  ;;  %v505_v16 = vpack.c.bf16 %v31_v15, %v30_v14  ;;  %v33_v18 = vld [vmem:[%s701_s3 + $0x58] sm:$0xff]  ;;  %v34_v20 = vld [vmem:[%s701_s3 + $0x60] sm:$0xff]  ;;  %v35_v21 = vld [vmem:[%s701_s3 + $0x68] sm:$0xff]  ;;  %s360_s6 = sshll.u32 %s573_s30, 4  ;;  %s361_s6 = int_to_ptr.vmem [resolvable:$true] %s360_s6 }
   0x9   :  { %498 = vmatprep.subr.bf16.mxu0 %v570_v3  ;;  %v508_v19 = vpack.c.bf16 %v33_v18, %v32_v17  ;;  %v511_v22 = vpack.c.bf16 %v35_v21, %v34_v20  ;;  %v36_v23 = vld [vmem:[%s701_s3 + $0x70] sm:$0xff]  ;;  %v37_v24 = vld [vmem:[%s701_s3 + $0x78] sm:$0xff]  ;;  %v21_v26 = vld [vmem:[%s698_s0] sm:$0xf]  ;;  %s546_s7 = scalar_lea.vmem %s361_s6, 64  ;;  %p551_p1 = scmp.lt.s32.totalorder %s361_s6, %s361_s6 }
   0xa   :  { %v514_v25 = vpack.c.bf16 %v37_v24, %v36_v23  ;;  %v38_v27 = vld [vmem:[%s702_s4] sm:$0xf]  ;;  %p547_p0 = scmp.ne.s32.totalorder %s361_s6, %s546_s7  ;;  %p552_p2 = scmp.lt.s32.totalorder %s546_s7, %s546_s7 }
   0xb   :  { %448 = vmatpush3.msk.msra.mxu1 %vm114_vm1, %v38_v27  ;;  %v372_v41 = vld [vmem:[%s699_s1] ss:$0 sm:$0xff] }
   0xc   :  { %500 = vmatpush3.bf16.msra.mxu0 %v499_v10  ;;  %516 = vmatprep.subr.bf16.mxu1 %v570_v3  ;;  %v373_v44 = vld [vmem:[%s700_s2] ss:$0 sm:$0xff]  ;;  %p553_p3 = por %p552_p2, %p551_p1 }
   0xd   :  { %501 = vmatprep.subr.bf16.mxu0 %v570_v3 }
   0xe   :  { %p554_p4 = pnand %p553_p3, %p547_p0 }
  0x10   :  { %503 = vmatpush3.bf16.msra.mxu0 %v502_v13 }
  0x11   :  { %504 = vmatprep.subr.bf16.mxu0 %v570_v3 }
  0x14   :  { %506 = vmatpush3.bf16.msra.mxu0 %v505_v16 }
  0x15   :  { %507 = vmatprep.subr.bf16.mxu0 %v570_v3 }
  0x18   :  { %509 = vmatpush3.bf16.msra.mxu0 %v508_v19 }
  0x19   :  { %510 = vmatprep.subr.bf16.mxu0 %v570_v3 }
  0x1c   :  { %512 = vmatpush3.bf16.msra.mxu0 %v511_v22 }
  0x1d   :  { %513 = vmatprep.subr.bf16.mxu0 %v570_v3 }
  0x20   :  { %515 = vmatpush3.bf16.msra.mxu0 %v514_v25 }
  0x21   :  { %487 = vmatprep.subr.mxu0 %v572_v6 }
  0x23   :  { %445 = vmatmul.mubr.f32.vlgmr.msra.gmra.mrb[0].mxu0 %v21_v26 }
  0x24   :  { %489 = vmatprep.mubr.msk.f32.mxu0 %vm571_vm0, %v572_v6  ;;  %488 = vmatpush3.msk.msra.mxu0 %vm114_vm1, %v38_v27 }
  0xf6   :  { %v105_v28 = vpop.f32.mrb[0].mxu0 }
  0xf7   :  { %v109_v29 = vmul.f32 0.03125, %v105_v28  ;;  %v446_v30 = vpop.f32.mrb[1].mxu0 }
  0xf9   :  { %450 = vmatmul.mubr.msk.f32.vlgmr.msra.gmra.mrb[0].mxu1 %vm110_vm2, %v109_v29 }
  0xfa   :  { %518 = vmatpush3.bf16.msra.mxu1 %v493_v4  ;;  %484 = vmatprep.mubr.msk.f32.mxu1 %vm571_vm0, %v572_v6 }
  0xfb   :  { %519 = vmatprep.subr.bf16.mxu1 %v570_v3 }
  0xfe   :  { %521 = vmatpush3.bf16.msra.mxu1 %v496_v7 }
  0xff   :  { %522 = vmatprep.subr.bf16.mxu1 %v570_v3 }
 0x102   :  { %524 = vmatpush3.bf16.msra.mxu1 %v499_v10 }
 0x103   :  { %525 = vmatprep.subr.bf16.mxu1 %v570_v3 }
 0x106   :  { %527 = vmatpush3.bf16.msra.mxu1 %v502_v13 }
 0x107   :  { %528 = vmatprep.subr.bf16.mxu1 %v570_v3 }
 0x10a   :  { %530 = vmatpush3.bf16.msra.mxu1 %v505_v16 }
 0x10b   :  { %531 = vmatprep.subr.bf16.mxu1 %v570_v3 }
 0x10e   :  { %533 = vmatpush3.bf16.msra.mxu1 %v508_v19 }
 0x10f   :  { %534 = vmatprep.subr.bf16.mxu1 %v570_v3 }
 0x112   :  { %536 = vmatpush3.bf16.msra.mxu1 %v511_v22 }
 0x113   :  { %537 = vmatprep.subr.bf16.mxu1 %v570_v3 }
 0x116   :  { %539 = vmatpush3.bf16.msra.mxu1 %v514_v25 }
 0x1cc   :  { %v184_v31 = vpop.f32.mrb[0].mxu1 }
 0x1cd   :  { %v188_v32 = vsub.f32 %v21_v26, %v184_v31  ;;  %v451_v33 = vpop.f32.mrb[1].mxu1 }
 0x1cf   :  { %v189_v34 = vmul.f32 %v188_v32, %v188_v32 }
 0x1d1   :  { %485 = vmatmul.mubr.f32.vlgmr.msra.gmra.mrb[2].mxu1 %v189_v34 }
 0x2a4   :  { %v256_v35 = vpop.f32.mrb[2].mxu1 }
 0x2a5   :  { %v260_v36 = vmul.f32 0.03125, %v256_v35  ;;  %v486_v37 = vpop.f32.mrb[3].mxu1 }
 0x2a7   :  { %v261_v38 = vadd.f32 1e-12, %v260_v36 }
 0x2a9   :  { %544 = vrsqrt.f32 %v261_v38 }
 0x2b3   :  { %v545_v39 = vpop.eup %544 }
 0x2b4   :  { %490 = vmatmul.mubr.msk.f32.vlgmr.msra.gmra.mrb[2].mxu0 %vm110_vm2, %v545_v39 }
 0x387   :  { %v332_v40 = vpop.f32.mrb[2].mxu0 }
 0x388   :  { %v338_v42 = vmul.f32 %v332_v40, %v188_v32  ;;  %v491_v43 = vpop.f32.mrb[3].mxu0 }
 0x38a   :  { %v345_v45 = vmul.f32 %v372_v41, %v338_v42 }
 0x38c   :  { %v352_v46 = vadd.f32 %v373_v44, %v345_v45 }
 0x38e   :  { %353 = vst [vmem:[#allocation2] sm:$0xf] %v352_v46 }
 0x38f   :  { %557 = shalt.err (!%p554_p4)
}
 0x390   :  { %s558_s9 = scalar_lea.hbm %s703_s5, 64 }
 0x391   :  { %p559_p5 = scmp.ne.s32.totalorder %s703_s5, %s558_s9  ;;  %p562_p6 = scmp.lt.u32.totalorder %s558_s9, %s703_s5 }
 0x393   :  { %p564_p7 = pnand %p562_p6, %p559_p5 }
 0x395   :  { %567 = shalt.err (!%p564_p7)
}
 0x396   :  { %363 = dma.vmem_to_hbm [thread:$0]  %s361_s6, 64, %s703_s5, [#allocation3]  }
 0x397   :  { %568 = dma.done.wait [#allocation3], 64  }
 0x398   :  { %569 = vsyncadd [#allocation3], 4294967232 }
 0x399   :  { %367 = vsyncpa [#allocation3], 1 }

</bundles_post_ra>
